<compile_context>
chip_gen: v7x
topology: tpu7x:2x2x1
jax: 0.10.0
libtpu: 0.0.40
codegen_flags: <defaults>
</compile_context>

<pallas_src>
import jax
import jax.numpy as jnp
from jax import lax
from jax.experimental import pallas as pl
from jax.experimental.pallas import tpu as pltpu

KSIZE = 5
STRIDE = 2
BN_EPS = 1e-5


def _feature_block_kernel(xcol_ref, wconv_ref, wqkv_ref, wo_ref, vec_ref, o_ref):
    c = o_ref.shape[1]
    xcol = xcol_ref[0]                        # (K*Cin, Lout), channels on sublanes, L on lanes
    vec = vec_ref[...]                        # (Cout, 8) packed per-channel vectors
    conv_b = vec[:, 0:1]
    bn_s, bn_b = vec[:, 1:2], vec[:, 2:3]
    bq, bk, bv, bo = vec[:, 3:4], vec[:, 4:5], vec[:, 5:6], vec[:, 6:7]

    # Conv1d(k=5, stride=2, valid) as a single im2col matmul; bias added once.
    h = jnp.dot(wconv_ref[...], xcol, preferred_element_type=jnp.float32) + conv_b

    # SiLU
    h = h * jax.nn.sigmoid(h)

    # BatchNorm1d (inference): folded per-channel scale / bias.
    h = h * bn_s + bn_b                       # (Cout, Lout)

    # Fused Q/K/V projection (Wq, bq pre-scaled by 1/sqrt(C) in the wrapper).
    qkv = jnp.dot(wqkv_ref[...], h, preferred_element_type=jnp.float32)   # (3C, Lout)
    q = qkv[0:c] + bq
    k = qkv[c:2 * c] + bk
    v = qkv[2 * c:3 * c] + bv

    # S[i, j] = sum_c q[c, i] * k[c, j]   (transpose-free contraction on C)
    s = lax.dot_general(q, k, dimension_numbers=(((0,), (0,)), ((), ())),
                        preferred_element_type=jnp.float32)               # (Lq, Lk)
    s = s - jnp.max(s, axis=-1, keepdims=True)
    e = jnp.exp(s)
    inv = pl.reciprocal(jnp.sum(e, axis=-1, keepdims=True), approx=True)  # EUP, ~free
    attn = e * inv

    # AV[c, i] = sum_j v[c, j] * attn[i, j]  (== v @ attn^T, transpose-free)
    av = lax.dot_general(v, attn, dimension_numbers=(((1,), (1,)), ((), ())),
                         preferred_element_type=jnp.float32)              # (C, Lq)
    out = jnp.dot(wo_ref[...], av, preferred_element_type=jnp.float32) + bo

    # dropout = identity (eval); residual with the attention input.
    o_ref[0] = (out + h).astype(o_ref.dtype)


def feature_block(x, params):
    """x: (B, Cin, L) float32 -> (B, Cout, (L - 5)//2 + 1), eval-mode forward."""
    B, Cin, L = x.shape
    Cout = params['conv_b'].shape[0]
    Lout = (L - KSIZE) // STRIDE + 1
    KC = KSIZE * Cin

    # ---- im2col: xcol[b, k*Cin + ci, t] = x[b, ci, STRIDE*t + k] ----
    cols = [x[:, :, k:k + STRIDE * (Lout - 1) + 1:STRIDE] for k in range(KSIZE)]
    xcol = jnp.concatenate(cols, axis=1).astype(jnp.float32)      # (B, K*Cin, Lout)

    # conv weight (Cout, Cin, K) -> (Cout, K*Cin) matching the xcol row order
    wconv = jnp.transpose(params['conv_w'], (0, 2, 1)).reshape(Cout, KC)

    # fold eval-mode BatchNorm into per-channel scale / bias
    bn_s = params['bn_gamma'] / jnp.sqrt(params['bn_var'] + BN_EPS)
    bn_b = params['bn_beta'] - params['bn_mean'] * bn_s

    # fold 1/sqrt(C) into the query projection; fuse Q/K/V weights
    sc = 1.0 / (Cout ** 0.5)
    wqkv = jnp.concatenate([params['wq'] * sc, params['wk'], params['wv']], axis=0)

    # pack all per-channel vectors into one (Cout, 8) operand
    vecs = jnp.stack([params['conv_b'], bn_s, bn_b,
                      params['bq'] * sc, params['bk'], params['bv'], params['bo'],
                      jnp.zeros((Cout,), jnp.float32)], axis=1)   # (Cout, 8)

    out = pl.pallas_call(
        _feature_block_kernel,
        out_shape=jax.ShapeDtypeStruct((B, Cout, Lout), jnp.float32),
        grid=(B,),
        in_specs=[
            pl.BlockSpec((1, KC, Lout), lambda b: (b, 0, 0)),     # per-batch im2col input
            pl.BlockSpec((Cout, KC), lambda b: (0, 0)),           # conv weight
            pl.BlockSpec((3 * Cout, Cout), lambda b: (0, 0)),     # fused Wq|Wk|Wv
            pl.BlockSpec((Cout, Cout), lambda b: (0, 0)),         # Wo
            pl.BlockSpec((Cout, 8), lambda b: (0, 0)),            # packed bias/BN vectors
        ],
        out_specs=pl.BlockSpec((1, Cout, Lout), lambda b: (b, 0, 0)),
        compiler_params=pltpu.CompilerParams(
            dimension_semantics=("parallel",),
            vmem_limit_bytes=48 * 1024 * 1024),
    )(xcol, wconv, wqkv, params['wo'], vecs)
    return out                                                    # already (B, Cout, Lout)


# ----------------------------- pure-JAX reference -----------------------------
def ref_forward(x, p):
    Cout = p['conv_b'].shape[0]
    y = lax.conv_general_dilated(
        x.astype(jnp.float32), p['conv_w'], window_strides=(STRIDE,),
        padding='VALID', dimension_numbers=('NCH', 'OIH', 'NCH'))
    y = y + p['conv_b'][None, :, None]
    y = y * jax.nn.sigmoid(y)
    y = ((y - p['bn_mean'][None, :, None])
         / jnp.sqrt(p['bn_var'][None, :, None] + BN_EPS)
         * p['bn_gamma'][None, :, None] + p['bn_beta'][None, :, None])

    def conv1x1(z, w, b):
        return jnp.einsum('oc,bcl->bol', w, z) + b[None, :, None]

    q = conv1x1(y, p['wq'], p['bq'])
    k = conv1x1(y, p['wk'], p['bk'])
    v = conv1x1(y, p['wv'], p['bv'])
    s = jnp.einsum('bci,bcj->bij', q, k) / (Cout ** 0.5)
    attn = jax.nn.softmax(s, axis=-1)
    o = jnp.einsum('bij,bcj->bic', attn, v)           # attn @ v^T -> (B, L, C)
    o = jnp.einsum('oc,blc->bol', p['wo'], o) + p['bo'][None, :, None]
    return o + y


if __name__ == "__main__":
    B, Cin, Cout, L = 2, 4, 8, 259            # Lout = (259 - 5)//2 + 1 = 128 (lane-dense)
    key = jax.random.PRNGKey(0)
    ks = jax.random.split(key, 16)
    params = dict(
        conv_w=0.2 * jax.random.normal(ks[0], (Cout, Cin, KSIZE), jnp.float32),
        conv_b=0.1 * jax.random.normal(ks[1], (Cout,), jnp.float32),
        bn_gamma=1.0 + 0.1 * jax.random.normal(ks[2], (Cout,), jnp.float32),
        bn_beta=0.1 * jax.random.normal(ks[3], (Cout,), jnp.float32),
        bn_mean=0.1 * jax.random.normal(ks[4], (Cout,), jnp.float32),
        bn_var=jnp.abs(1.0 + 0.1 * jax.random.normal(ks[5], (Cout,), jnp.float32)),
        wq=0.2 * jax.random.normal(ks[6], (Cout, Cout), jnp.float32),
        bq=0.1 * jax.random.normal(ks[7], (Cout,), jnp.float32),
        wk=0.2 * jax.random.normal(ks[8], (Cout, Cout), jnp.float32),
        bk=0.1 * jax.random.normal(ks[9], (Cout,), jnp.float32),
        wv=0.2 * jax.random.normal(ks[10], (Cout, Cout), jnp.float32),
        bv=0.1 * jax.random.normal(ks[11], (Cout,), jnp.float32),
        wo=0.2 * jax.random.normal(ks[12], (Cout, Cout), jnp.float32),
        bo=0.1 * jax.random.normal(ks[13], (Cout,), jnp.float32),
    )
    x = jax.random.normal(ks[14], (B, Cin, L), jnp.float32)

    out = jax.block_until_ready(feature_block(x, params))
    ref = jax.block_until_ready(ref_forward(x, params))
    assert out.shape == (B, Cout, (L - KSIZE) // STRIDE + 1), out.shape
    err = float(jnp.max(jnp.abs(out - ref)))
    assert err < 1e-2, f"max abs error {err}"
    print("KERNEL_OK")
</pallas_src>

<mosaic_0001>
module attributes {stable_mosaic.version = 11 : i64} {
  func.func @_feature_block_kernel(%arg0: i32, %arg1: memref<1x20x128xf32, #tpu.memory_space<vmem>>, %arg2: memref<8x20xf32, #tpu.memory_space<vmem>>, %arg3: memref<24x8xf32, #tpu.memory_space<vmem>>, %arg4: memref<8x8xf32, #tpu.memory_space<vmem>>, %arg5: memref<8x8xf32, #tpu.memory_space<vmem>>, %arg6: memref<1x8x128xf32, #tpu.memory_space<vmem>>) attributes {dimension_semantics = [#tpu.dimension_semantics<parallel>], iteration_bounds = array<i64: 2>, scalar_prefetch = 0 : i64, scratch_operands = 0 : i64, tpu.core_type = #tpu.core_type<tc>, window_params = [{transform_indices = @transform_0, window_bounds = array<i64: 1, 20, 128>}, {pipeline_mode = #tpu.pipeline_mode<synchronous>, transform_indices = @transform_1, window_bounds = array<i64: 8, 20>}, {pipeline_mode = #tpu.pipeline_mode<synchronous>, transform_indices = @transform_2, window_bounds = array<i64: 24, 8>}, {pipeline_mode = #tpu.pipeline_mode<synchronous>, transform_indices = @transform_3, window_bounds = array<i64: 8, 8>}, {pipeline_mode = #tpu.pipeline_mode<synchronous>, transform_indices = @transform_4, window_bounds = array<i64: 8, 8>}, {transform_indices = @transform_5, window_bounds = array<i64: 1, 8, 128>}]} {
    %c0 = arith.constant 0 : index
    %c0_0 = arith.constant 0 : index
    %c0_1 = arith.constant 0 : index
    %0 = vector.load %arg1[%c0, %c0_0, %c0_1] : memref<1x20x128xf32, #tpu.memory_space<vmem>>, vector<1x20x128xf32>
    %1 = vector.shape_cast %0 : vector<1x20x128xf32> to vector<20x128xf32>
    %c0_2 = arith.constant 0 : index
    %c0_3 = arith.constant 0 : index
    %2 = vector.load %arg5[%c0_2, %c0_3] : memref<8x8xf32, #tpu.memory_space<vmem>>, vector<8x8xf32>
    %3 = vector.extract_strided_slice %2 {offsets = [0, 0], sizes = [8, 1], strides = [1, 1]} : vector<8x8xf32> to vector<8x1xf32>
    %4 = vector.extract_strided_slice %2 {offsets = [0, 1], sizes = [8, 1], strides = [1, 1]} : vector<8x8xf32> to vector<8x1xf32>
    %5 = vector.extract_strided_slice %2 {offsets = [0, 2], sizes = [8, 1], strides = [1, 1]} : vector<8x8xf32> to vector<8x1xf32>
    %6 = vector.extract_strided_slice %2 {offsets = [0, 3], sizes = [8, 1], strides = [1, 1]} : vector<8x8xf32> to vector<8x1xf32>
    %7 = vector.extract_strided_slice %2 {offsets = [0, 4], sizes = [8, 1], strides = [1, 1]} : vector<8x8xf32> to vector<8x1xf32>
    %8 = vector.extract_strided_slice %2 {offsets = [0, 5], sizes = [8, 1], strides = [1, 1]} : vector<8x8xf32> to vector<8x1xf32>
    %9 = vector.extract_strided_slice %2 {offsets = [0, 6], sizes = [8, 1], strides = [1, 1]} : vector<8x8xf32> to vector<8x1xf32>
    %c0_4 = arith.constant 0 : index
    %c0_5 = arith.constant 0 : index
    %10 = vector.load %arg2[%c0_4, %c0_5] : memref<8x20xf32, #tpu.memory_space<vmem>>, vector<8x20xf32>
    %cst = arith.constant dense<0.000000e+00> : vector<8x128xf32>
    %11 = tpu.matmul %10, %1, %cst {dimension_numbers = #tpu.dot_dimension_numbers<[1], [0], [0], [1], [0, 0, 1, 1], [], []>} : vector<8x20xf32>, vector<20x128xf32>, vector<8x128xf32> -> vector<8x128xf32>
    %12 = vector.broadcast %3 : vector<8x1xf32> to vector<8x128xf32>
    %13 = arith.addf %11, %12 : vector<8x128xf32>
    %14 = arith.negf %13 : vector<8x128xf32>
    %15 = math.exp %14 : vector<8x128xf32>
    %cst_6 = arith.constant 1.000000e+00 : f32
    %16 = vector.broadcast %cst_6 : f32 to vector<8x128xf32>
    %17 = arith.addf %16, %15 : vector<8x128xf32>
    %18 = arith.divf %16, %17 : vector<8x128xf32>
    %19 = arith.mulf %13, %18 : vector<8x128xf32>
    %20 = vector.broadcast %4 : vector<8x1xf32> to vector<8x128xf32>
    %21 = arith.mulf %19, %20 : vector<8x128xf32>
    %22 = vector.broadcast %5 : vector<8x1xf32> to vector<8x128xf32>
    %23 = arith.addf %21, %22 : vector<8x128xf32>
    %c0_7 = arith.constant 0 : index
    %c0_8 = arith.constant 0 : index
    %24 = vector.load %arg3[%c0_7, %c0_8] : memref<24x8xf32, #tpu.memory_space<vmem>>, vector<24x8xf32>
    %cst_9 = arith.constant dense<0.000000e+00> : vector<24x128xf32>
    %25 = tpu.matmul %24, %23, %cst_9 {dimension_numbers = #tpu.dot_dimension_numbers<[1], [0], [0], [1], [0, 0, 1, 1], [], []>} : vector<24x8xf32>, vector<8x128xf32>, vector<24x128xf32> -> vector<24x128xf32>
    %26 = vector.extract_strided_slice %25 {offsets = [0, 0], sizes = [8, 128], strides = [1, 1]} : vector<24x128xf32> to vector<8x128xf32>
    %27 = vector.broadcast %6 : vector<8x1xf32> to vector<8x128xf32>
    %28 = arith.addf %26, %27 : vector<8x128xf32>
    %29 = vector.extract_strided_slice %25 {offsets = [8, 0], sizes = [8, 128], strides = [1, 1]} : vector<24x128xf32> to vector<8x128xf32>
    %30 = vector.broadcast %7 : vector<8x1xf32> to vector<8x128xf32>
    %31 = arith.addf %29, %30 : vector<8x128xf32>
    %32 = vector.extract_strided_slice %25 {offsets = [16, 0], sizes = [8, 128], strides = [1, 1]} : vector<24x128xf32> to vector<8x128xf32>
    %33 = vector.broadcast %8 : vector<8x1xf32> to vector<8x128xf32>
    %34 = arith.addf %32, %33 : vector<8x128xf32>
    %cst_10 = arith.constant dense<0.000000e+00> : vector<128x128xf32>
    %35 = tpu.matmul %28, %31, %cst_10 {dimension_numbers = #tpu.dot_dimension_numbers<[0], [0], [1], [1], [0, 1, 1, 1], [], []>} : vector<8x128xf32>, vector<8x128xf32>, vector<128x128xf32> -> vector<128x128xf32>
    %cst_11 = arith.constant dense<0xFF800000> : vector<128xf32>
    %36 = vector.multi_reduction <maximumf>, %35, %cst_11 [1] : vector<128x128xf32> to vector<128xf32>
    %37 = vector.shape_cast %36 : vector<128xf32> to vector<128x1xf32>
    %38 = vector.broadcast %37 : vector<128x1xf32> to vector<128x128xf32>
    %39 = arith.subf %35, %38 : vector<128x128xf32>
    %40 = math.exp %39 : vector<128x128xf32>
    %cst_12 = arith.constant dense<0.000000e+00> : vector<128xf32>
    %41 = vector.multi_reduction <add>, %40, %cst_12 [1] : vector<128x128xf32> to vector<128xf32>
    %42 = vector.shape_cast %41 : vector<128xf32> to vector<128x1xf32>
    %43 = tpu.reciprocal %42 {approx = true} : vector<128x1xf32> -> vector<128x1xf32>
    %44 = vector.broadcast %43 : vector<128x1xf32> to vector<128x128xf32>
    %45 = arith.mulf %40, %44 : vector<128x128xf32>
    %cst_13 = arith.constant dense<0.000000e+00> : vector<8x128xf32>
    %46 = tpu.matmul %34, %45, %cst_13 {dimension_numbers = #tpu.dot_dimension_numbers<[1], [1], [0], [0], [0, 0, 1, 0], [], []>} : vector<8x128xf32>, vector<128x128xf32>, vector<8x128xf32> -> vector<8x128xf32>
    %c0_14 = arith.constant 0 : index
    %c0_15 = arith.constant 0 : index
    %47 = vector.load %arg4[%c0_14, %c0_15] : memref<8x8xf32, #tpu.memory_space<vmem>>, vector<8x8xf32>
    %cst_16 = arith.constant dense<0.000000e+00> : vector<8x128xf32>
    %48 = tpu.matmul %47, %46, %cst_16 {dimension_numbers = #tpu.dot_dimension_numbers<[1], [0], [0], [1], [0, 0, 1, 1], [], []>} : vector<8x8xf32>, vector<8x128xf32>, vector<8x128xf32> -> vector<8x128xf32>
    %49 = vector.broadcast %9 : vector<8x1xf32> to vector<8x128xf32>
    %50 = arith.addf %48, %49 : vector<8x128xf32>
    %51 = arith.addf %50, %23 : vector<8x128xf32>
    %c0_17 = arith.constant 0 : index
    %c0_18 = arith.constant 0 : index
    %c0_19 = arith.constant 0 : index
    %52 = vector.load %arg6[%c0_17, %c0_18, %c0_19] : memref<1x8x128xf32, #tpu.memory_space<vmem>>, vector<1x8x128xf32>
    %53 = vector.shape_cast %52 : vector<1x8x128xf32> to vector<8x128xf32>
    %54 = vector.shape_cast %51 : vector<8x128xf32> to vector<1x8x128xf32>
    tpu.vector_store %arg6[%c0_17, %c0_18, %c0_19], %54 {strides = array<i32>} : memref<1x8x128xf32, #tpu.memory_space<vmem>>, vector<1x8x128xf32>,
    return
  }
  func.func @transform_0(%arg0: i32) -> (i32, i32, i32) {
    %c0_i32 = arith.constant 0 : i32
    %c0_i32_0 = arith.constant 0 : i32
    %c0_i32_1 = arith.constant 0 : i32
    return %arg0, %c0_i32, %c0_i32_0 : i32, i32, i32
  }
  func.func @transform_1(%arg0: i32) -> (i32, i32) {
    %c0_i32 = arith.constant 0 : i32
    %c0_i32_0 = arith.constant 0 : i32
    %c0_i32_1 = arith.constant 0 : i32
    return %c0_i32, %c0_i32_0 : i32, i32
  }
  func.func @transform_2(%arg0: i32) -> (i32, i32) {
    %c0_i32 = arith.constant 0 : i32
    %c0_i32_0 = arith.constant 0 : i32
    %c0_i32_1 = arith.constant 0 : i32
    return %c0_i32, %c0_i32_0 : i32, i32
  }
  func.func @transform_3(%arg0: i32) -> (i32, i32) {
    %c0_i32 = arith.constant 0 : i32
    %c0_i32_0 = arith.constant 0 : i32
    %c0_i32_1 = arith.constant 0 : i32
    return %c0_i32, %c0_i32_0 : i32, i32
  }
  func.func @transform_4(%arg0: i32) -> (i32, i32) {
    %c0_i32 = arith.constant 0 : i32
    %c0_i32_0 = arith.constant 0 : i32
    %c0_i32_1 = arith.constant 0 : i32
    return %c0_i32, %c0_i32_0 : i32, i32
  }
  func.func @transform_5(%arg0: i32) -> (i32, i32, i32) {
    %c0_i32 = arith.constant 0 : i32
    %c0_i32_0 = arith.constant 0 : i32
    %c0_i32_1 = arith.constant 0 : i32
    return %arg0, %c0_i32, %c0_i32_0 : i32, i32, i32
  }
}

</mosaic_0001>

<bundles_post_ra>
// kernel: tpu_custom_call.1
= control target key start
LH: loop header
LB: loop body
LE: loop exit
PB: predicated region body
PF: predicated region fallthrough
CT: control target
= control target key end

     0   :  { %10 = vsyncpa [#allocation3], 0  ;;  %s1722_s0 = inlined_call_operand.vmem [shape: f32[2,20,128], index: 0, kind: input, shape index: {}]   ;;  %s1723_s1 = inlined_call_operand.vmem [shape: f32[8,20], index: 1, kind: input, shape index: {}]   ;;  %s1724_s2 = inlined_call_operand.vmem [shape: f32[24,8], index: 2, kind: input, shape index: {}]   ;;  %s1725_s3 = inlined_call_operand.vmem [shape: f32[8,8], index: 3, kind: input, shape index: {}]   ;;  %s1726_s4 = inlined_call_operand.vmem [shape: f32[8,8], index: 4, kind: input, shape index: {}]   ;;  %s1727_s5 = inlined_call_operand.hbm [shape: f32[2,8,128], index: 5, kind: output, shape index: {}]  }
   0x1   :  { %12 = vsyncpa [#allocation3 + $0x1], 0  ;;  %s1448_s18 = smov 0   ;;  %s1450_s19 = smov 0  }
   0x2   :  { %s1452_s20 = smov 0   ;;  %s1454_s21 = smov 0  }
   0x3 LB: > { %s1469_s22 = sadd.s32 4294967295, %s1405_s21   ;;  %s1028_s23 = sadd.s32 4294967294, %s1405_s21   ;;  %s1405_s21 = sphi %s1454_s21, %s1733_s21   ;;  %s1401_s20 = sphi %s1452_s20, %s1732_s20   ;;  %s1397_s19 = sphi %s1450_s19, %s1731_s19   ;;  %s1393_s18 = sphi %s1448_s18, %s1730_s18  }
   0x4   : > { %s1473_s24 = sadd.s32 1, %s1405_s21   ;;  %s135_s25 = sadd.s32 1, %s1401_s20 }
   0x5   : > { %s132_s26 = ssub.s32 %s1405_s21, %s1473_s24  ;;  %p145_p0 = scmp.ne.s32.totalorder %s1401_s20, %s1397_s19 }
   0x6   : > { %p133_p1 = scmp.eq.s32.totalorder %s132_s26, 0  ;;  %p146_p2 = scmp.eq.s32.totalorder %s1469_s22, 1 }
   0x7   : > { %p151_p3 = scmp.ne.s32.totalorder %s1397_s19, %s1393_s18  ;;  %p152_p4 = scmp.eq.s32.totalorder %s1028_s23, 1 }
   0x8   : > { %s1484_s27 = scalar_select %p133_p1, %s1401_s20, %s135_s25  }
   0x9   : > { %p1486_p5 = por %p146_p2, %p145_p0  ;;  %p1490_p6 = por %p152_p4, %p151_p3 }
   0xa   : > { %p1031_p7 = scmp.ge.s32.totalorder %s1405_s21, 1  ;;  %p190_p8 = scmp.lt.s32.totalorder %s1405_s21, 3 }
   0xc   : > { %p191_p9 = pnand %p1031_p7, %p190_p8 }
   0xd   : > { %p218_p10 = scmp.lt.s32.totalorder (!%p191_p9), %s1469_s22, 1  ;;  %v1407_v0 = vmov (!%p191_p9), 0.0|0.0   ;;  %vm1408_vm0 = vmmov (!%p191_p9), 0   ;;  %v1409_v1 = vmov (!%p191_p9), 0.0   ;;  %v1503_v2 = vld [vmem:[%s1726_s4] sm:$0xff] (!%p191_p9)  ;;  %v1410_v3 = vmov (!%p191_p9), 0  }
   0xe   : > { %194 = sbr.rel (%p191_p9) target bundleno = 1668 (0x684), region = 40  ;;  %1191 = vmatprep.subr.bf16.mxu0 (!%p191_p9), %v1407_v0  ;;  %1111 = vmatprep.mubr.msk.f32.mxu0 (!%p191_p9), %vm1408_vm0, %v1409_v1  ;;  %v1411_v4 = vmov (!%p191_p9), 2   ;;  %v1412_v7 = vmov (!%p191_p9), 1   ;;  %vm237_vm1 = vcmask (!%p191_p9), 1043456   ;;  %v227_v10 = vld [vmem:[%s1723_s1] sm:$0xff] (!%p191_p9)  ;;  %vm233_vm2 = vcmask (!%p191_p9), 162816  }
   0xf   : > { %1268 = vset.pattern.permute.xlu0 (!%p191_p9), %v1410_v3  ;;  %1270 = vset.pattern.permute.xlu1 (!%p191_p9), %v1411_v4  ;;  %v1413_v11 = vmov (!%p191_p9), 3   ;;  %v328_v25 = vld [vmem:[%s1724_s2] sm:$0xff] (!%p191_p9)  ;;  %vm331_vm3 = vcmask (!%p191_p9), 64512   ;;  %v329_v26 = vld [vmem:[%s1724_s2 + $0x8] sm:$0xff] (!%p191_p9)  ;;  %v1414_v27 = vmov (!%p191_p9), 4   ;;  %v330_v28 = vld [vmem:[%s1724_s2 + $0x10] sm:$0xff] (!%p191_p9) }
  0x10   : > { %230 = vperm.xlu0 (!%p191_p9), %1268, %v1503_v2   ;;  %324 = vperm.xlu1 (!%p191_p9), %1270, %v1503_v2   ;;  %s215_s6 = sand.u32 (!%p191_p9), 1, %s1397_s19  }
  0x11   : > { %1194 = vmatprep.subr.bf16.mxu1 (!%p191_p9), %v1407_v0  ;;  %1183 = vmatprep.mubr.msk.f32.mxu1 (!%p191_p9), %vm1408_vm0, %v1409_v1  ;;  %s956_s14 = scalar_lea.sflag (!%p191_p9), [#allocation3], %s215_s6 }
  0x14   : > { %1269 = vset.pattern.permute.xlu0 (!%p191_p9), %v1412_v7  ;;  %1271 = vset.pattern.permute.xlu1 (!%p191_p9), %v1413_v11 }
  0x15   : > { %s219_s7 = scalar_select %p218_p10, %s1469_s22, 1  ;;  %319 = vperm.xlu0 %1269, %v1503_v2   ;;  %422 = vperm.xlu1 %1271, %v1503_v2  }
  0x17   : > { %s1218_s8 = smul.u32 24, %s219_s7  ;;  %s1032_s7 = sshll.u32 %s215_s6, 3 }
  0x18   : > { %s217_s9 = scalar_lea.vmem [#allocation2], %s1032_s7 }
  0x19   : > { %s222_s11 = scalar_lea.vmem %s1722_s0, %s1218_s8  ;;  %1272 = vset.pattern.permute.xlu1 %v1414_v27  ;;  %s1058_s8 = sshll.u32 %s1469_s22, 7 }
  0x1a   : > { %v223_v5 = vld [vmem:[%s222_s11] sm:$0xff]  ;;  %v224_v6 = vld [vmem:[%s222_s11 + $0x8] sm:$0xff]  ;;  %v225_v9 = vld [vmem:[%s222_s11 + $0x10] sm:$0xf]  ;;  %427 = vperm.xlu1 %1272, %v1503_v2   ;;  %s969_s10 = sshll.u32 %s217_s9, 4  ;;  %s1680_s13 = scalar_lea.hbm %s1727_s5, %s1058_s8  ;;  %s1682_s10 = int_to_ptr.vmem [resolvable:$true] %s969_s10 }
  0x1b   : > { %v1192_v8 = vpack.c.bf16 %v224_v6, %v223_v5  ;;  %s1343_s15 = scalar_lea.vmem %s1682_s10, 128  ;;  %s1417_s22 = smov [#allocation2]  }
  0x1c   : > { %p1344_p11 = scmp.ne.s32.totalorder %s1682_s10, %s1343_s15  ;;  %s1347_s16 = sshll.u32 %s1417_s22, 4  ;;  %s1348_s16 = int_to_ptr.vmem [resolvable:$false] %s1347_s16 }
  0x1d   : > { %1193 = vmatpush3.bf16.msra.mxu0 %v1192_v8  ;;  %s1349_s17 = scalar_lea.vmem %s1348_s16, 256  ;;  %p1350_p0 = scmp.lt.s32.totalorder %s1682_s10, %s1348_s16 }
  0x1e   : > { %1109 = vmatprep.subr.mxu0 %v1409_v1  ;;  %p1345_p12 = pnand %p1344_p11, %p1486_p5  ;;  %p1351_p1 = scmp.lt.s32.totalorder %s1349_s17, %s1343_s15 }
  0x20   : > { %p1346_p13 = pneg %p1345_p12  ;;  %p1352_p2 = por %p1351_p1, %p1350_p0 }
  0x21   : > { %1110 = vmatpush3.msk.msra.mxu0 %vm237_vm1, %v225_v9  ;;  %v1415_v9 = vmov 5  }
  0x22   : > { %1112 = vmatmul.mubr.msk.f32.vlgmr.msra.gmra.mrb[0].mxu0 %vm233_vm2, %v227_v10  ;;  %1114 = vmatprep.subr.mxu0 %v1409_v1  ;;  %p1353_p3 = pnand %p1352_p2, %p1346_p13 }
  0x23   : > { %1116 = vmatprep.mubr.msk.f32.mxu0 %vm1408_vm0, %v1409_v1  ;;  %1273 = vset.pattern.permute.xlu1 %v1415_v9 }
  0x8f   : > { %v231_v12 = vpop.permute.xlu0 %230  ;;  %v325_v22 = vpop.permute.xlu1 %324 }
  0x94   : > { %v320_v20 = vpop.permute.xlu0 %319  ;;  %v423_v29 = vpop.permute.xlu1 %422 }
  0x99   : > { %v428_v33 = vpop.permute.xlu1 %427 }
  0xf5   : > { %v307_v13 = vpop.f32.mrb[0].mxu0 }
  0xf6   : > { %v308_v14 = vadd.f32 %v307_v13, %v231_v12  ;;  %v1113_v15 = vpop.f32.mrb[1].mxu0 }
  0xf8   : > { %v1036_v16 = vmul.f32 -1.442695, %v308_v14 }
  0xfa   : > { %1275 = vpow2.f32 %v1036_v16 }
 0x104   : > { %v1276_v17 = vpop.eup %1275 }
 0x105   : > { %v314_v18 = vadd.f32 1.0, %v1276_v17 }
 0x107   : > { %1277 = vrcp.f32 %v314_v18 }
 0x111   : > { %v1278_v19 = vpop.eup %1277 }
 0x112   : > { %v317_v21 = vmul.f32 %v1278_v19, %v308_v14 }
 0x114   : > { %v322_v23 = vmul.f32 %v320_v20, %v317_v21 }
 0x116   : > { %v1523_v24 = vadd.f32 %v325_v22, %v322_v23 }
 0x118   : > { %1115 = vmatpush3.msra.mxu0 %v1523_v24 }
 0x119   : > { %1117 = vmatmul.mubr.msk.f32.vlgmr.msra.gmra.mrb[2].mxu0 %vm331_vm3, %v328_v25 }
 0x11a   : > { %1119 = vmatprep.mubr.msk.f32.mxu0 %vm1408_vm0, %v1409_v1 }
 0x11d   : > { %1120 = vmatmul.mubr.msk.f32.gmra.mrb[4].mxu0 %vm331_vm3, %v329_v26 }
 0x11e   : > { %1122 = vmatprep.mubr.msk.f32.mxu0 %vm1408_vm0, %v1409_v1 }
 0x121   : > { %1123 = vmatmul.mubr.msk.f32.gmra.mrb[6].mxu0 %vm331_vm3, %v330_v28 }
 0x1ec   : > { %v407_v30 = vpop.f32.mrb[2].mxu0 }
 0x1ed   : > { %v425_v31 = vadd.f32 %v423_v29, %v407_v30  ;;  %v1118_v32 = vpop.f32.mrb[3].mxu0 }
 0x1ef   : > { %436 = vxpose.xlu0.b32.start.end [1/1] (short) %v425_v31, 128 }
 0x1f0   : > { %v412_v34 = vpop.f32.mrb[4].mxu0 }
 0x1f1   : > { %v430_v35 = vadd.f32 %v428_v33, %v412_v34  ;;  %v1121_v36 = vpop.f32.mrb[5].mxu0 }
 0x1f3   : > { %1125 = vmatprep.subr.mxu0 %v430_v35 }
 0x1f4   : > { %1126 = vmatpush3.msra.mxu0 %v430_v35  ;;  %v1544_v37 = vpop.f32.mrb[6].mxu0 }
 0x1f5   : > { %1186 = vmatprep.subr.mxu0 %v1409_v1  ;;  %v1124_v38 = vpop.f32.mrb[7].mxu0 }
 0x26f   : > { %v452_v39 = vpop.trf.xlu0 }
 0x270   : > { %1127 = vmatprep.mubr.msk.f32.mxu0 %vm331_vm3, %v452_v39 }
 0x273   : > { %v453_v40 = vpop.trf.xlu0 }
 0x274   : > { %1128 = vmatmul.mubr.msk.f32.vlgmr.msra.gmra.mrb[8].mxu0 %vm331_vm3, %v453_v40 }
 0x277   : > { %v454_v41 = vpop.trf.xlu0 }
 0x278   : > { %1130 = vmatprep.mubr.msk.f32.mxu0 %vm331_vm3, %v454_v41 }
 0x27b   : > { %v455_v42 = vpop.trf.xlu0 }
 0x27c   : > { %1131 = vmatmul.mubr.msk.f32.gmra.mrb[10].mxu0 %vm331_vm3, %v455_v42 }
 0x27f   : > { %v456_v43 = vpop.trf.xlu0 }
 0x280   : > { %1133 = vmatprep.mubr.msk.f32.mxu0 %vm331_vm3, %v456_v43 }
 0x283   : > { %v457_v44 = vpop.trf.xlu0 }
 0x284   : > { %1134 = vmatmul.mubr.msk.f32.gmra.mrb[12].mxu0 %vm331_vm3, %v457_v44 }
 0x287   : > { %v458_v45 = vpop.trf.xlu0 }
 0x288   : > { %1136 = vmatprep.mubr.msk.f32.mxu0 %vm331_vm3, %v458_v45 }
 0x28b   : > { %v459_v46 = vpop.trf.xlu0 }
 0x28c   : > { %1137 = vmatmul.mubr.msk.f32.gmra.mrb[14].mxu0 %vm331_vm3, %v459_v46 }
 0x28f   : > { %v460_v47 = vpop.trf.xlu0 }
 0x290   : > { %1139 = vmatprep.mubr.msk.f32.mxu0 %vm331_vm3, %v460_v47 }
 0x293   : > { %v461_v48 = vpop.trf.xlu0 }
 0x294   : > { %1140 = vmatmul.mubr.msk.f32.gmra.mrb[16].mxu0 %vm331_vm3, %v461_v48 }
 0x297   : > { %v462_v49 = vpop.trf.xlu0 }
 0x298   : > { %1142 = vmatprep.mubr.msk.f32.mxu0 %vm331_vm3, %v462_v49 }
 0x29b   : > { %v463_v50 = vpop.trf.xlu0 }
 0x29c   : > { %1143 = vmatmul.mubr.msk.f32.gmra.mrb[18].mxu0 %vm331_vm3, %v463_v50 }
 0x29f   : > { %v464_v51 = vpop.trf.xlu0 }
 0x2a0   : > { %1145 = vmatprep.mubr.msk.f32.mxu0 %vm331_vm3, %v464_v51 }
 0x2a3   : > { %v465_v52 = vpop.trf.xlu0 }
 0x2a4   : > { %1146 = vmatmul.mubr.msk.f32.gmra.mrb[20].mxu0 %vm331_vm3, %v465_v52 }
 0x2a7   : > { %v466_v53 = vpop.trf.xlu0 }
 0x2a8   : > { %1148 = vmatprep.mubr.msk.f32.mxu0 %vm331_vm3, %v466_v53 }
 0x2ab   : > { %v467_v54 = vpop.trf.xlu0 }
 0x2ac   : > { %1149 = vmatmul.mubr.msk.f32.gmra.mrb[22].mxu0 %vm331_vm3, %v467_v54 }
 0x2ad   : > { %1188 = vmatprep.mubr.msk.f32.mxu0 %vm1408_vm0, %v1409_v1 }
 0x347   : > { %v1129_v55 = vpop.f32.mrb[8].mxu0 }
 0x348   : > { %663 = vmax.xlane.f32.xlu0 %v1129_v55  ;;  %v582_v56 = vpop.f32.mrb[9].mxu0 }
 0x349   : > { %661 = vmax.xlane.f32.xlu1 %v582_v56 }
 0x34f   : > { %v1132_v57 = vpop.f32.mrb[10].mxu0 }
 0x350   : > { %667 = vmax.xlane.f32.xlu1 %v1132_v57  ;;  %v592_v58 = vpop.f32.mrb[11].mxu0 }
 0x354   : > { %665 = vmax.xlane.f32.xlu1 %v592_v58 }
 0x357   : > { %v1135_v59 = vpop.f32.mrb[12].mxu0 }
 0x358   : > { %671 = vmax.xlane.f32.xlu1 %v1135_v59  ;;  %v602_v60 = vpop.f32.mrb[13].mxu0 }
 0x35c   : > { %669 = vmax.xlane.f32.xlu1 %v602_v60 }
 0x35f   : > { %v1138_v61 = vpop.f32.mrb[14].mxu0 }
 0x360   : > { %675 = vmax.xlane.f32.xlu1 %v1138_v61  ;;  %v612_v62 = vpop.f32.mrb[15].mxu0 }
 0x364   : > { %673 = vmax.xlane.f32.xlu1 %v612_v62 }
 0x367   : > { %v1564_v63 = vpop.f32.mrb[16].mxu0 }
 0x368   : > { %679 = vmax.xlane.f32.xlu1 %v1564_v63  ;;  %v1567_v1 = vpop.f32.mrb[17].mxu0 }
 0x36c   : > { %677 = vmax.xlane.f32.xlu1 %v1567_v1 }
 0x36f   : > { %v1570_v3 = vpop.f32.mrb[18].mxu0 }
 0x370   : > { %683 = vmax.xlane.f32.xlu1 %v1570_v3  ;;  %v1573_v4 = vpop.f32.mrb[19].mxu0 }
 0x374   : > { %681 = vmax.xlane.f32.xlu1 %v1573_v4 }
 0x377   : > { %v1576_v5 = vpop.f32.mrb[20].mxu0 }
 0x378   : > { %687 = vmax.xlane.f32.xlu1 %v1576_v5  ;;  %v1579_v6 = vpop.f32.mrb[21].mxu0 }
 0x37c   : > { %685 = vmax.xlane.f32.xlu1 %v1579_v6 }
 0x37f   : > { %v1582_v7 = vpop.f32.mrb[22].mxu0 }
 0x380   : > { %v1584_v8 = vpop.f32.mrb[23].mxu0 }
 0x381   : > { %689 = vmax.xlane.f32.xlu1 %v1584_v8 }
 0x385   : > { %691 = vmax.xlane.f32.xlu1 %v1582_v7 }
 0x3d5   : > { %v664_v10 = vpop.xlane.xlu0 %663 }
 0x3d6   : > { %v694_v11 = vsub.f32 %v1129_v55, %v664_v10  ;;  %v662_v12 = vpop.xlane.xlu1 %661 }
 0x3d7   : > { %v693_v13 = vsub.f32 %v582_v56, %v662_v12 }
 0x3d8   : > { %v711_v14 = vmul.f32 1.442695, %v694_v11 }
 0x3d9   : > { %v709_v15 = vmul.f32 1.442695, %v693_v13 }
 0x3da   : > { %1279 = vpow2.f32 %v711_v14 }
 0x3db   : > { %1281 = vpow2.f32 %v709_v15 }
 0x3dd   : > { %v668_v16 = vpop.xlane.xlu1 %667 }
 0x3de   : > { %v696_v17 = vsub.f32 %v1132_v57, %v668_v16 }
 0x3e0   : > { %v715_v18 = vmul.f32 1.442695, %v696_v17 }
 0x3e1   : > { %v666_v19 = vpop.xlane.xlu1 %665 }
 0x3e2   : > { %1283 = vpow2.f32 %v715_v18  ;;  %v695_v20 = vsub.f32 %v592_v58, %v666_v19 }
 0x3e4   : > { %v1588_v21 = vpop.eup %1279  ;;  %v713_v22 = vmul.f32 1.442695, %v695_v20 }
 0x3e5   : > { %v672_v23 = vpop.xlane.xlu1 %671  ;;  %743 = vadd.xlane.f32.xlu1 %v1588_v21  ;;  %v1591_v26 = vpop.eup %1281 }
 0x3e6   : > { %1285 = vpow2.f32 %v713_v22  ;;  %v698_v25 = vsub.f32 %v1135_v59, %v672_v23 }
 0x3e8   : > { %v719_v27 = vmul.f32 1.442695, %v698_v25 }
 0x3e9   : > { %v670_v28 = vpop.xlane.xlu1 %669  ;;  %741 = vadd.xlane.f32.xlu1 %v1591_v26 }
 0x3ea   : > { %1287 = vpow2.f32 %v719_v27  ;;  %v697_v29 = vsub.f32 %v602_v60, %v670_v28 }
 0x3ec   : > { %v1594_v30 = vpop.eup %1283  ;;  %v717_v31 = vmul.f32 1.442695, %v697_v29 }
 0x3ed   : > { %v676_v32 = vpop.xlane.xlu1 %675  ;;  %747 = vadd.xlane.f32.xlu1 %v1594_v30 }
 0x3ee   : > { %1289 = vpow2.f32 %v717_v31  ;;  %v700_v33 = vsub.f32 %v1138_v61, %v676_v32 }
 0x3f0   : > { %v1597_v34 = vpop.eup %1285  ;;  %v723_v35 = vmul.f32 1.442695, %v700_v33 }
 0x3f1   : > { %v674_v36 = vpop.xlane.xlu1 %673  ;;  %745 = vadd.xlane.f32.xlu1 %v1597_v34 }
 0x3f2   : > { %1291 = vpow2.f32 %v723_v35  ;;  %v699_v38 = vsub.f32 %v612_v62, %v674_v36 }
 0x3f4   : > { %v1600_v39 = vpop.eup %1287  ;;  %v721_v40 = vmul.f32 1.442695, %v699_v38 }
 0x3f5   : > { %v680_v41 = vpop.xlane.xlu1 %679  ;;  %751 = vadd.xlane.f32.xlu1 %v1600_v39 }
 0x3f6   : > { %1293 = vpow2.f32 %v721_v40  ;;  %v702_v43 = vsub.f32 %v1564_v63, %v680_v41 }
 0x3f8   : > { %v1603_v42 = vpop.eup %1289  ;;  %v727_v48 = vmul.f32 1.442695, %v702_v43 }
 0x3f9   : > { %v678_v44 = vpop.xlane.xlu1 %677  ;;  %749 = vadd.xlane.f32.xlu1 %v1603_v42 }
 0x3fa   : > { %v701_v45 = vsub.f32 %v1567_v1, %v678_v44 }
 0x3fc   : > { %v1608_v46 = vpop.eup %1291  ;;  %v725_v47 = vmul.f32 1.442695, %v701_v45 }
 0x3fd   : > { %v684_v49 = vpop.xlane.xlu1 %683  ;;  %755 = vadd.xlane.f32.xlu1 %v1608_v46 }
 0x3fe   : > { %1295 = vpow2.f32 %v725_v47  ;;  %v704_v50 = vsub.f32 %v1570_v3, %v684_v49 }
 0x3ff   : > { %1297 = vpow2.f32 %v727_v48 }
 0x400   : > { %v1612_v51 = vpop.eup %1293  ;;  %v731_v52 = vmul.f32 1.442695, %v704_v50 }
 0x401   : > { %v682_v53 = vpop.xlane.xlu1 %681  ;;  %753 = vadd.xlane.f32.xlu1 %v1612_v51 }
 0x402   : > { %1299 = vpow2.f32 %v731_v52  ;;  %v703_v54 = vsub.f32 %v1573_v4, %v682_v53 }
 0x404   : > { %v729_v55 = vmul.f32 1.442695, %v703_v54 }
 0x405   : > { %v688_v56 = vpop.xlane.xlu1 %687 }
 0x406   : > { %1301 = vpow2.f32 %v729_v55  ;;  %v706_v57 = vsub.f32 %v1576_v5, %v688_v56 }
 0x408   : > { %v1617_v58 = vpop.eup %1295  ;;  %v735_v59 = vmul.f32 1.442695, %v706_v57 }
 0x409   : > { %v686_v60 = vpop.xlane.xlu1 %685  ;;  %757 = vadd.xlane.f32.xlu1 %v1617_v58  ;;  %v1621_v62 = vpop.eup %1297 }
 0x40a   : > { %1303 = vpow2.f32 %v735_v59  ;;  %v705_v61 = vsub.f32 %v1579_v6, %v686_v60 }
 0x40c   : > { %v1623_v63 = vpop.eup %1299  ;;  %v733_v1 = vmul.f32 1.442695, %v705_v61 }
 0x40d   : > { %763 = vadd.xlane.f32.xlu0 %v1623_v63  ;;  %759 = vadd.xlane.f32.xlu1 %v1621_v62 }
 0x40e   : > { %1305 = vpow2.f32 %v733_v1  ;;  %v690_v3 = vpop.xlane.xlu1 %689 }
 0x40f   : > { %v707_v4 = vsub.f32 %v1584_v8, %v690_v3 }
 0x410   : > { %v1628_v5 = vpop.eup %1301 }
 0x411   : > { %v737_v9 = vmul.f32 1.442695, %v707_v4  ;;  %761 = vadd.xlane.f32.xlu1 %v1628_v5 }
 0x412   : > { %v692_v10 = vpop.xlane.xlu1 %691 }
 0x413   : > { %1307 = vpow2.f32 %v737_v9  ;;  %v708_v6 = vsub.f32 %v1582_v7, %v692_v10 }
 0x414   : > { %v1632_v11 = vpop.eup %1303 }
 0x415   : > { %v739_v12 = vmul.f32 1.442695, %v708_v6  ;;  %767 = vadd.xlane.f32.xlu0 %v1632_v11 }
 0x417   : > { %1309 = vpow2.f32 %v739_v12 }
 0x418   : > { %v1635_v13 = vpop.eup %1305 }
 0x419   : > { %765 = vadd.xlane.f32.xlu1 %v1635_v13 }
 0x41d   : > { %v1638_v8 = vpop.eup %1307 }
 0x41e   : > { %769 = vadd.xlane.f32.xlu1 %v1638_v8 }
 0x421   : > { %v1641_v14 = vpop.eup %1309 }
 0x422   : > { %771 = vadd.xlane.f32.xlu0 %v1641_v14 }
 0x42f   : > { %432 = vperm.xlu1 %1273, %v1503_v2  }
 0x472   : > { %v744_v7 = vpop.xlane.xlu1 %743 }
 0x473   : > { %1311 = vrcp.f32 %v744_v7 }
 0x476   : > { %v742_v15 = vpop.xlane.xlu1 %741 }
 0x477   : > { %1313 = vrcp.f32 %v742_v15 }
 0x47a   : > { %v748_v16 = vpop.xlane.xlu1 %747 }
 0x47b   : > { %1315 = vrcp.f32 %v748_v16 }
 0x47d   : > { %v1312_v18 = vpop.eup %1311 }
 0x47e   : > { %v746_v17 = vpop.xlane.xlu1 %745  ;;  %v790_v23 = vmul.f32 %v1312_v18, %v1588_v21 }
 0x47f   : > { %1317 = vrcp.f32 %v746_v17 }
 0x481   : > { %v1314_v19 = vpop.eup %1313 }
 0x482   : > { %v752_v20 = vpop.xlane.xlu1 %751  ;;  %v789_v22 = vmul.f32 %v1314_v19, %v1591_v26 }
 0x483   : > { %1319 = vrcp.f32 %v752_v20 }
 0x484   : > { %v1195_v25 = vpack.c.bf16 %v790_v23, %v789_v22 }
 0x485   : > { %v1316_v28 = vpop.eup %1315 }
 0x486   : > { %1196 = vmatpush3.bf16.xpose.msra.mxu1 %v1195_v25  ;;  %v750_v27 = vpop.xlane.xlu1 %749  ;;  %v792_v33 = vmul.f32 %v1316_v28, %v1594_v30 }
 0x487   : > { %1321 = vrcp.f32 %v750_v27  ;;  %1197 = vmatprep.subr.bf16.mxu1 %v1407_v0 }
 0x489   : > { %v1318_v29 = vpop.eup %1317 }
 0x48a   : > { %v756_v31 = vpop.xlane.xlu1 %755  ;;  %v791_v32 = vmul.f32 %v1318_v29, %v1597_v34 }
 0x48b   : > { %1323 = vrcp.f32 %v756_v31 }
 0x48c   : > { %v1198_v35 = vpack.c.bf16 %v792_v33, %v791_v32 }
 0x48d   : > { %v1320_v36 = vpop.eup %1319 }
 0x48e   : > { %1199 = vmatpush3.bf16.xpose.msra.mxu1 %v1198_v35  ;;  %v754_v26 = vpop.xlane.xlu1 %753  ;;  %v794_v40 = vmul.f32 %v1320_v36, %v1600_v39 }
 0x48f   : > { %1325 = vrcp.f32 %v754_v26  ;;  %1200 = vmatprep.subr.bf16.mxu1 %v1407_v0 }
 0x491   : > { %v1322_v21 = vpop.eup %1321 }
 0x492   : > { %v793_v38 = vmul.f32 %v1322_v21, %v1603_v42 }
 0x494   : > { %v1201_v41 = vpack.c.bf16 %v794_v40, %v793_v38 }
 0x495   : > { %v1324_v44 = vpop.eup %1323 }
 0x496   : > { %1202 = vmatpush3.bf16.xpose.msra.mxu1 %v1201_v41  ;;  %v758_v43 = vpop.xlane.xlu1 %757  ;;  %v796_v47 = vmul.f32 %v1324_v44, %v1608_v46 }
 0x497   : > { %1203 = vmatprep.subr.bf16.mxu1 %v1407_v0  ;;  %1327 = vrcp.f32 %v758_v43 }
 0x499   : > { %v1326_v30 = vpop.eup %1325 }
 0x49a   : > { %v760_v34 = vpop.xlane.xlu1 %759  ;;  %v795_v45 = vmul.f32 %v1326_v30, %v1612_v51  ;;  %v764_v42 = vpop.xlane.xlu0 %763 }
 0x49b   : > { %1329 = vrcp.f32 %v760_v34 }
 0x49c   : > { %v1204_v48 = vpack.c.bf16 %v796_v47, %v795_v45 }
 0x49e   : > { %1205 = vmatpush3.bf16.xpose.msra.mxu1 %v1204_v48  ;;  %v762_v49 = vpop.xlane.xlu1 %761 }
 0x49f   : > { %1206 = vmatprep.subr.bf16.mxu1 %v1407_v0  ;;  %1331 = vrcp.f32 %v762_v49 }
 0x4a0   : > { %1333 = vrcp.f32 %v764_v42 }
 0x4a1   : > { %v1328_v39 = vpop.eup %1327 }
 0x4a2   : > { %v768_v53 = vpop.xlane.xlu0 %767  ;;  %v797_v54 = vmul.f32 %v1328_v39, %v1617_v58 }
 0x4a5   : > { %v1330_v50 = vpop.eup %1329 }
 0x4a6   : > { %v766_v52 = vpop.xlane.xlu1 %765  ;;  %v798_v55 = vmul.f32 %v1330_v50, %v1621_v62 }
 0x4a7   : > { %1335 = vrcp.f32 %v766_v52 }
 0x4a8   : > { %v1207_v51 = vpack.c.bf16 %v798_v55, %v797_v54  ;;  %1337 = vrcp.f32 %v768_v53 }
 0x4a9   : > { %v1332_v46 = vpop.eup %1331 }
 0x4aa   : > { %1208 = vmatpush3.bf16.xpose.msra.mxu1 %v1207_v51  ;;  %v1334_v56 = vpop.eup %1333  ;;  %v799_v57 = vmul.f32 %v1332_v46, %v1628_v5 }
 0x4ab   : > { %1209 = vmatprep.subr.bf16.mxu1 %v1407_v0  ;;  %v770_v59 = vpop.xlane.xlu1 %769  ;;  %v800_v61 = vmul.f32 %v1334_v56, %v1623_v63 }
 0x4ad   : > { %v1210_v1 = vpack.c.bf16 %v800_v61, %v799_v57 }
 0x4af   : > { %v772_v60 = vpop.xlane.xlu0 %771  ;;  %v433_v7 = vpop.permute.xlu1 %432 }
 0x4b0   : > { %1339 = vrcp.f32 %v772_v60  ;;  %v435_v15 = vadd.f32 %v433_v7, %v1544_v37 }
 0x4b1   : > { %v1336_v3 = vpop.eup %1335  ;;  %1341 = vrcp.f32 %v770_v59 }
 0x4b2   : > { %1211 = vmatpush3.bf16.xpose.msra.mxu1 %v1210_v1  ;;  %v1338_v58 = vpop.eup %1337  ;;  %v801_v62 = vmul.f32 %v1336_v3, %v1635_v13  ;;  %v1416_v13 = vmov 6  }
 0x4b3   : > { %1212 = vmatprep.subr.bf16.mxu1 %v1407_v0  ;;  %v802_v4 = vmul.f32 %v1338_v58, %v1632_v11  ;;  %1274 = vset.pattern.permute.xlu0 %v1416_v13 }
 0x4b4   : > { %877 = vperm.xlu0 %1274, %v1503_v2  }
 0x4b5   : > { %v1213_v9 = vpack.c.bf16 %v802_v4, %v801_v62 }
 0x4ba   : > { %v1340_v10 = vpop.eup %1339  ;;  %1214 = vmatpush3.bf16.xpose.msra.mxu1 %v1213_v9 }
 0x4bb   : > { %v1342_v5 = vpop.eup %1341  ;;  %1215 = vmatprep.subr.bf16.mxu1 %v1407_v0  ;;  %v804_v63 = vmul.f32 %v1340_v10, %v1641_v14  ;;  %v875_v0 = vld [vmem:[%s1725_s3] sm:$0xff] }
 0x4bc   : > { %v803_v6 = vmul.f32 %v1342_v5, %v1638_v8 }
 0x4be   : > { %v1216_v12 = vpack.c.bf16 %v804_v63, %v803_v6 }
 0x4c2   : > { %1217 = vmatpush3.bf16.xpose.msra.mxu1 %v1216_v12 }
 0x4c9   : > { %1184 = vmatmul.mubr.f32.vlgmr.msra.gmra.mrb[0].mxu1 %v435_v15 }
 0x533   : > { %v878_v8 = vpop.permute.xlu0 %877 }
 0x59c   : > { %v871_v11 = vpop.f32.mrb[0].mxu1 }
 0x59d   : > { %v1185_v16 = vpop.f32.mrb[1].mxu1  ;;  %1187 = vmatpush3.msra.mxu0 %v871_v11 }
 0x59e   : > { %1189 = vmatmul.mubr.msk.f32.vlgmr.msra.gmra.mrb[24].mxu0 %vm331_vm3, %v875_v0 }
 0x671   : > { %v949_v14 = vpop.f32.mrb[24].mxu0 }
 0x672   : > { %v950_v37 = vadd.f32 %v949_v14, %v878_v8  ;;  %v1190_v17 = vpop.f32.mrb[25].mxu0 }
 0x674   : > { %v953_v2 = vadd.f32 %v950_v37, %v1523_v24 }
 0x676   : > { %954 = vst [vmem:[%s217_s9] sm:$0xff] %v953_v2 }
 0x677   : > { %1356 = shalt.err (!%p1353_p3)
}
 0x678   : > { %s1357_s23 = scalar_lea.hbm %s1680_s13, 128  ;;  %s1361_s30 = scalar_lea.hbm %s1727_s5, 256 }
 0x679   : > { %p1358_p4 = scmp.ne.s32.totalorder %s1680_s13, %s1357_s23  ;;  %p1362_p9 = scmp.lt.u32.totalorder %s1680_s13, %s1727_s5 }
 0x67a   : > { %p1363_p10 = scmp.lt.u32.totalorder %s1361_s30, %s1357_s23  ;;  %p1365_p12 = scmp.lt.u32.totalorder %s1357_s23, %s1680_s13 }
 0x67b   : > { %p1359_p7 = pnand %p1358_p4, %p1486_p5 }
 0x67c   : > { %p1364_p11 = por %p1363_p10, %p1362_p9 }
 0x67d   : > { %p1360_p8 = pneg %p1359_p7 }
 0x67e   : > { %p1366_p13 = por %p1365_p12, %p1364_p11 }
 0x680   : > { %p1367_p0 = pnand %p1366_p13, %p1360_p8 }
 0x682   : > { %1370 = shalt.err (!%p1367_p0)
}
 0x683   : > { %1219 = dma.vmem_to_hbm [thread:$0]  (%p1486_p5), %s1682_s10, 128, %s1680_s13, %s956_s14  }
 0x684 PF: > { %p1225_p1 = scmp.ge.s32.totalorder %s1405_s21, 2  ;;  %s981_s8 = sand.u32 1, %s1393_s18  }
 0x685   : > { %s982_s9 = scalar_lea.sflag [#allocation3], %s981_s8 }
 0x686   : > { %p1222_p2 = pnand %p1225_p1, %p1490_p6 }
 0x688   : > { %1388 = dma.done.wait (!%p1222_p2), %s982_s9, 128  }
 0x689   : > { %1390 = vsyncadd (!%p1222_p2), %s982_s9, 4294967168  ;;  %p15_p3 = scmp.ge.s32.totalorder %s1473_s24, 4   ;;  %s1730_s18 = smov %s1397_s19 }
 0x68a   : > { %s1731_s19 = smov %s1401_s20  ;;  %s1732_s20 = smov %s1484_s27 }
 0x68b   : > { %s1733_s21 = smov %s1473_s24  ;;  %17 = sbr.rel (!%p15_p3) target bundleno = 3 (0x3), region = 75 }
 0x692   :  { %987 = vsyncpa [#allocation3], 1 }
 0x693   :  { %989 = vsyncpa [#allocation3 + $0x1], 1 }

</bundles_post_ra>
